<compile_context>
chip_gen: v5e
topology: v5e:2x2
jax: 0.10.0
libtpu: 0.0.40
codegen_flags: <defaults>
</compile_context>

<pallas_src>
from functools import partial

import jax
import jax.numpy as jnp
from jax import lax
from jax.experimental import pallas as pl
from jax.experimental.pallas import tpu as pltpu


def _embeddings_kernel(pad_id, eps, H, V, ids_ref, tab_ref, triu_ref,
                       gamma_ref, beta_ref, out_ref):
    TB, S = ids_ref.shape[1], ids_ref.shape[2]
    K, H_pad = tab_ref.shape                 # K = V + (S+1)

    ids = ids_ref[0]                                               # (TB, S) int32

    # --- position index within the [pad_id, pad_id+S] window ----------------
    #   win = cumsum(mask, axis=1) * mask   (0 for padding tokens)
    # Prefix sum done as a batched (TB,S)@(S,S) upper-triangular matmul so the
    # MXU output width is TB instead of 1.
    is_tok = ids != pad_id                                         # (TB, S) bool
    mask_f = is_tok.astype(jnp.float32)
    cums = jnp.dot(mask_f, triu_ref[...],
                   preferred_element_type=jnp.float32)             # (TB, S)
    win = cums.astype(jnp.int32) * is_tok.astype(jnp.int32)        # (TB, S) in [0, S]

    # --- fused embedding gather: one combined one-hot, one MXU matmul -------
    # Row r of the one-hot has a 1 at column ids[r] (rel part, cols [0,V)) and
    # a 1 at column V + win[r] (pos-window part, cols [V, V+S+1)).
    iota_k = lax.broadcasted_iota(jnp.int32, (TB, S, K), 2)
    onehot = jnp.logical_or(iota_k == ids[:, :, None],
                            iota_k == (win + V)[:, :, None]).astype(jnp.float32)
    onehot = onehot.reshape(TB * S, K)        # layout-preserving when S % 8 == 0
    x = jnp.dot(onehot, tab_ref[...],
                preferred_element_type=jnp.float32)                # (TB*S, H_pad)

    # --- LayerNorm over the true hidden width H ------------------------------
    # Columns >= H of x are exactly zero (zero-padded table), so sums over
    # H_pad equal sums over H; the centered padded columns contribute exactly
    # (H_pad - H) * mean^2 to the squared sum, which is subtracted back out.
    mean = jnp.sum(x, axis=-1, keepdims=True) * (1.0 / H)
    xc = x - mean
    ssq = jnp.sum(xc * xc, axis=-1, keepdims=True)
    var = (ssq - (H_pad - H) * mean * mean) * (1.0 / H)
    normed = xc * lax.rsqrt(var + eps)
    y = normed * gamma_ref[...] + beta_ref[...]   # padded cols -> 0 (gamma/beta zero-padded)

    # TODO(synk): nn.Dropout is stochastic at train time; inference-mode identity here.
    out_ref[0] = y                                                  # lane-dense store


def _choose_tb(B, S, H_pad, target_rows=256, vmem_budget=24 * 2**20):
    """Pick rows-per-step: aim TB*S ~ MXU width, keep >=2 grid steps, cap VMEM."""
    divs = [d for d in range(1, B + 1) if B % d == 0]
    tb = 1
    for d in divs:
        if d == 1 or d * S <= target_rows:
            tb = d
    # keep at least 2 grid steps when B allows, so the parallel batch axis can
    # be split across v7x's two TensorCores
    if B // tb < 2:
        for d in reversed(divs):
            if B // d >= 2:
                tb = d
                break
    # crude VMEM cap (double-buffered output block + in-kernel temporaries)
    while tb > 1 and 8 * tb * S * H_pad * 4 > vmem_budget:
        smaller = [d for d in divs if d < tb]
        tb = smaller[-1] if smaller else 1
    return tb


def graph_bert_embeddings(input_ids, rel_table, pos_table, gamma, beta,
                          pad_id, eps=1e-12, block_batch=None):
    B, S = input_ids.shape
    V, H = rel_table.shape
    P, _ = pos_table.shape
    pad_id = int(pad_id)
    assert pad_id + S + 1 <= P, "position window [pad_id, pad_id+S] must fit in pos_table"

    W = S + 1
    K = V + W
    H_pad = ((H + 127) // 128) * 128          # lane-dense output stores

    # stacked [rel_table ; pos_table window], zero-padded on the hidden axis
    pos_win = pos_table[pad_id:pad_id + W]                       # (W, H)
    table = jnp.concatenate([rel_table, pos_win], axis=0)        # (K, H)
    gamma_p = gamma.reshape(1, H).astype(jnp.float32)
    beta_p = beta.reshape(1, H).astype(jnp.float32)
    if H_pad != H:
        table = jnp.pad(table, ((0, 0), (0, H_pad - H)))
        gamma_p = jnp.pad(gamma_p, ((0, 0), (0, H_pad - H)))
        beta_p = jnp.pad(beta_p, ((0, 0), (0, H_pad - H)))
    table = table.astype(jnp.float32)

    # grid-invariant upper-triangular prefix-sum operator (t <= s)
    triu = (jnp.arange(S)[:, None] <= jnp.arange(S)[None, :]).astype(jnp.float32)

    TB = _choose_tb(B, S, H_pad) if block_batch is None else int(block_batch)
    assert B % TB == 0
    NB = B // TB
    ids_r = input_ids.astype(jnp.int32).reshape(NB, TB, S)

    kernel = partial(_embeddings_kernel, pad_id, float(eps), int(H), int(V))

    # raise the scoped VMEM limit only if the estimated footprint needs it
    vmem_est = (2 * (TB * S * 4 + TB * S * H_pad * 4)      # ids + out, double-buffered
                + 2 * (K * H_pad * 4 + S * S * 4 + 2 * H_pad * 4)  # tables / triu / affine
                + 6 * TB * S * max(K, H_pad) * 4)           # in-kernel temporaries
    cp_kwargs = dict(dimension_semantics=("parallel",))
    if vmem_est > 16 * 2**20:
        cp_kwargs["vmem_limit_bytes"] = min(int(vmem_est * 2), 100 * 2**20)

    out = pl.pallas_call(
        kernel,
        out_shape=jax.ShapeDtypeStruct((NB, TB * S, H_pad), jnp.float32),
        grid=(NB,),
        in_specs=[
            pl.BlockSpec((1, TB, S), lambda b: (b, 0, 0)),     # ids, TB rows per step
            pl.BlockSpec((K, H_pad), lambda b: (0, 0)),        # stacked rel+pos table
            pl.BlockSpec((S, S), lambda b: (0, 0)),            # prefix-sum operator
            pl.BlockSpec((1, H_pad), lambda b: (0, 0)),        # LayerNorm gamma (padded)
            pl.BlockSpec((1, H_pad), lambda b: (0, 0)),        # LayerNorm beta  (padded)
        ],
        out_specs=pl.BlockSpec((1, TB * S, H_pad), lambda b: (b, 0, 0)),
        compiler_params=pltpu.CompilerParams(**cp_kwargs),
    )(ids_r, table, triu, gamma_p, beta_p)

    out = out.reshape(B, S, H_pad)
    return out[..., :H] if H_pad != H else out


def _reference(input_ids, rel_table, pos_table, gamma, beta, pad_id, eps=1e-12):
    emb = rel_table[input_ids]                                   # (B, S, H)
    mask = (input_ids != pad_id).astype(jnp.int32)
    pos_ids = jnp.cumsum(mask, axis=1) * mask + pad_id
    emb = emb + pos_table[pos_ids]
    mean = emb.mean(-1, keepdims=True)
    var = ((emb - mean) ** 2).mean(-1, keepdims=True)
    return (emb - mean) / jnp.sqrt(var + eps) * gamma[0] + beta[0]


if __name__ == "__main__":
    # Config (edge_hidden_size == hidden_size, as the module's LayerNorm implies)
    B, S, H = 4, 8, 32
    pad_id = 1
    label_rp = 16
    V = label_rp + 4                 # rel_feature_embeddings vocab
    P = 64                           # max_position_embeddings
    eps = 1e-12

    key = jax.random.PRNGKey(0)
    k_rel, k_pos, k_ids = jax.random.split(key, 3)

    rel_table = 0.02 * jax.random.normal(k_rel, (V, H), dtype=jnp.float32)
    rel_table = rel_table.at[pad_id].set(0.0)   # nn.Embedding padding_idx row is zero
    pos_table = 0.02 * jax.random.normal(k_pos, (P, H), dtype=jnp.float32)
    gamma = jnp.ones((1, H), dtype=jnp.float32)  # PyTorch LayerNorm default init
    beta = jnp.zeros((1, H), dtype=jnp.float32)

    input_ids = jax.random.randint(k_ids, (B, S), 0, V, dtype=jnp.int32)
    input_ids = input_ids.at[:, -2:].set(pad_id)   # trailing padding tokens

    out = graph_bert_embeddings(input_ids, rel_table, pos_table, gamma, beta,
                                pad_id, eps)
    out = jax.block_until_ready(out)

    ref = _reference(input_ids, rel_table, pos_table, gamma, beta, pad_id, eps)
    if not bool(jnp.allclose(out, ref, atol=1e-4, rtol=1e-4)):
        raise AssertionError("Pallas kernel output does not match reference")

    print("KERNEL_OK")
</pallas_src>

<mosaic_0001>
module attributes {stable_mosaic.version = 11 : i64} {
  func.func @_embeddings_kernel(%arg0: i32, %arg1: memref<1x2x8xi32, #tpu.memory_space<vmem>>, %arg2: memref<29x128xf32, #tpu.memory_space<vmem>>, %arg3: memref<8x8xf32, #tpu.memory_space<vmem>>, %arg4: memref<1x128xf32, #tpu.memory_space<vmem>>, %arg5: memref<1x128xf32, #tpu.memory_space<vmem>>, %arg6: memref<1x16x128xf32, #tpu.memory_space<vmem>>) attributes {dimension_semantics = [#tpu.dimension_semantics<parallel>], iteration_bounds = array<i64: 2>, scalar_prefetch = 0 : i64, scratch_operands = 0 : i64, tpu.core_type = #tpu.core_type<tc>, window_params = [{transform_indices = @transform_0, window_bounds = array<i64: 1, 2, 8>}, {pipeline_mode = #tpu.pipeline_mode<synchronous>, transform_indices = @transform_1, window_bounds = array<i64: 29, 128>}, {pipeline_mode = #tpu.pipeline_mode<synchronous>, transform_indices = @transform_2, window_bounds = array<i64: 8, 8>}, {pipeline_mode = #tpu.pipeline_mode<synchronous>, transform_indices = @transform_3, window_bounds = array<i64: 1, 128>}, {pipeline_mode = #tpu.pipeline_mode<synchronous>, transform_indices = @transform_4, window_bounds = array<i64: 1, 128>}, {transform_indices = @transform_5, window_bounds = array<i64: 1, 16, 128>}]} {
    %c0 = arith.constant 0 : index
    %c0_0 = arith.constant 0 : index
    %c0_1 = arith.constant 0 : index
    %0 = vector.load %arg1[%c0, %c0_0, %c0_1] : memref<1x2x8xi32, #tpu.memory_space<vmem>>, vector<1x2x8xi32>
    %1 = vector.shape_cast %0 : vector<1x2x8xi32> to vector<2x8xi32>
    %c1_i32 = arith.constant 1 : i32
    %2 = vector.broadcast %c1_i32 : i32 to vector<2x8xi32>
    %3 = arith.cmpi ne, %1, %2 : vector<2x8xi32>
    %4 = arith.extui %3 : vector<2x8xi1> to vector<2x8xi32>
    %5 = arith.sitofp %4 : vector<2x8xi32> to vector<2x8xf32>
    %c0_2 = arith.constant 0 : index
    %c0_3 = arith.constant 0 : index
    %6 = vector.load %arg3[%c0_2, %c0_3] : memref<8x8xf32, #tpu.memory_space<vmem>>, vector<8x8xf32>
    %cst = arith.constant dense<0.000000e+00> : vector<2x8xf32>
    %7 = tpu.matmul %5, %6, %cst {dimension_numbers = #tpu.dot_dimension_numbers<[1], [0], [0], [1], [0, 0, 1, 1], [], []>} : vector<2x8xf32>, vector<8x8xf32>, vector<2x8xf32> -> vector<2x8xf32>
    %8 = arith.fptosi %7 : vector<2x8xf32> to vector<2x8xi32>
    %9 = arith.extui %3 : vector<2x8xi1> to vector<2x8xi32>
    %10 = arith.muli %8, %9 : vector<2x8xi32>
    %11 = tpu.iota {dimensions = array<i32: 2>} : vector<2x8x29xi32>
    %12 = vector.shape_cast %1 : vector<2x8xi32> to vector<2x8x1xi32>
    %13 = vector.broadcast %12 : vector<2x8x1xi32> to vector<2x8x29xi32>
    %14 = arith.cmpi eq, %11, %13 : vector<2x8x29xi32>
    %c20_i32 = arith.constant 20 : i32
    %15 = vector.broadcast %c20_i32 : i32 to vector<2x8xi32>
    %16 = arith.addi %10, %15 : vector<2x8xi32>
    %17 = vector.shape_cast %16 : vector<2x8xi32> to vector<2x8x1xi32>
    %18 = vector.broadcast %17 : vector<2x8x1xi32> to vector<2x8x29xi32>
    %19 = arith.cmpi eq, %11, %18 : vector<2x8x29xi32>
    %20 = arith.ori %14, %19 : vector<2x8x29xi1>
    %21 = arith.extui %20 : vector<2x8x29xi1> to vector<2x8x29xi32>
    %22 = arith.sitofp %21 : vector<2x8x29xi32> to vector<2x8x29xf32>
    %23 = vector.shape_cast %22 : vector<2x8x29xf32> to vector<16x29xf32>
    %c0_4 = arith.constant 0 : index
    %c0_5 = arith.constant 0 : index
    %24 = vector.load %arg2[%c0_4, %c0_5] : memref<29x128xf32, #tpu.memory_space<vmem>>, vector<29x128xf32>
    %cst_6 = arith.constant dense<0.000000e+00> : vector<16x128xf32>
    %25 = tpu.matmul %23, %24, %cst_6 {dimension_numbers = #tpu.dot_dimension_numbers<[1], [0], [0], [1], [0, 0, 1, 1], [], []>} : vector<16x29xf32>, vector<29x128xf32>, vector<16x128xf32> -> vector<16x128xf32>
    %cst_7 = arith.constant dense<0.000000e+00> : vector<16xf32>
    %26 = vector.multi_reduction <add>, %25, %cst_7 [1] : vector<16x128xf32> to vector<16xf32>
    %27 = vector.shape_cast %26 : vector<16xf32> to vector<16x1xf32>
    %cst_8 = arith.constant 3.125000e-02 : f32
    %28 = vector.broadcast %cst_8 : f32 to vector<16x1xf32>
    %29 = arith.mulf %27, %28 : vector<16x1xf32>
    %30 = vector.broadcast %29 : vector<16x1xf32> to vector<16x128xf32>
    %31 = arith.subf %25, %30 : vector<16x128xf32>
    %32 = arith.mulf %31, %31 : vector<16x128xf32>
    %cst_9 = arith.constant dense<0.000000e+00> : vector<16xf32>
    %33 = vector.multi_reduction <add>, %32, %cst_9 [1] : vector<16x128xf32> to vector<16xf32>
    %34 = vector.shape_cast %33 : vector<16xf32> to vector<16x1xf32>
    %cst_10 = arith.constant 9.600000e+01 : f32
    %35 = vector.broadcast %cst_10 : f32 to vector<16x1xf32>
    %36 = arith.mulf %35, %29 : vector<16x1xf32>
    %37 = arith.mulf %36, %29 : vector<16x1xf32>
    %38 = arith.subf %34, %37 : vector<16x1xf32>
    %cst_11 = arith.constant 3.125000e-02 : f32
    %39 = vector.broadcast %cst_11 : f32 to vector<16x1xf32>
    %40 = arith.mulf %38, %39 : vector<16x1xf32>
    %cst_12 = arith.constant 9.99999996E-13 : f32
    %41 = vector.broadcast %cst_12 : f32 to vector<16x1xf32>
    %42 = arith.addf %40, %41 : vector<16x1xf32>
    %43 = math.rsqrt %42 : vector<16x1xf32>
    %44 = vector.broadcast %43 : vector<16x1xf32> to vector<16x128xf32>
    %45 = arith.mulf %31, %44 : vector<16x128xf32>
    %c0_13 = arith.constant 0 : index
    %c0_14 = arith.constant 0 : index
    %46 = vector.load %arg4[%c0_13, %c0_14] : memref<1x128xf32, #tpu.memory_space<vmem>>, vector<1x128xf32>
    %47 = vector.broadcast %46 : vector<1x128xf32> to vector<16x128xf32>
    %48 = arith.mulf %45, %47 : vector<16x128xf32>
    %c0_15 = arith.constant 0 : index
    %c0_16 = arith.constant 0 : index
    %49 = vector.load %arg5[%c0_15, %c0_16] : memref<1x128xf32, #tpu.memory_space<vmem>>, vector<1x128xf32>
    %50 = vector.broadcast %49 : vector<1x128xf32> to vector<16x128xf32>
    %51 = arith.addf %48, %50 : vector<16x128xf32>
    %c0_17 = arith.constant 0 : index
    %c0_18 = arith.constant 0 : index
    %c0_19 = arith.constant 0 : index
    %52 = vector.load %arg6[%c0_17, %c0_18, %c0_19] : memref<1x16x128xf32, #tpu.memory_space<vmem>>, vector<1x16x128xf32>
    %53 = vector.shape_cast %52 : vector<1x16x128xf32> to vector<16x128xf32>
    %54 = vector.shape_cast %51 : vector<16x128xf32> to vector<1x16x128xf32>
    tpu.vector_store %arg6[%c0_17, %c0_18, %c0_19], %54 {strides = array<i32>} : memref<1x16x128xf32, #tpu.memory_space<vmem>>, vector<1x16x128xf32>,
    return
  }
  func.func @transform_0(%arg0: i32) -> (i32, i32, i32) {
    %c0_i32 = arith.constant 0 : i32
    %c0_i32_0 = arith.constant 0 : i32
    %c0_i32_1 = arith.constant 0 : i32
    return %arg0, %c0_i32, %c0_i32_0 : i32, i32, i32
  }
  func.func @transform_1(%arg0: i32) -> (i32, i32) {
    %c0_i32 = arith.constant 0 : i32
    %c0_i32_0 = arith.constant 0 : i32
    %c0_i32_1 = arith.constant 0 : i32
    return %c0_i32, %c0_i32_0 : i32, i32
  }
  func.func @transform_2(%arg0: i32) -> (i32, i32) {
    %c0_i32 = arith.constant 0 : i32
    %c0_i32_0 = arith.constant 0 : i32
    %c0_i32_1 = arith.constant 0 : i32
    return %c0_i32, %c0_i32_0 : i32, i32
  }
  func.func @transform_3(%arg0: i32) -> (i32, i32) {
    %c0_i32 = arith.constant 0 : i32
    %c0_i32_0 = arith.constant 0 : i32
    %c0_i32_1 = arith.constant 0 : i32
    return %c0_i32, %c0_i32_0 : i32, i32
  }
  func.func @transform_4(%arg0: i32) -> (i32, i32) {
    %c0_i32 = arith.constant 0 : i32
    %c0_i32_0 = arith.constant 0 : i32
    %c0_i32_1 = arith.constant 0 : i32
    return %c0_i32, %c0_i32_0 : i32, i32
  }
  func.func @transform_5(%arg0: i32) -> (i32, i32, i32) {
    %c0_i32 = arith.constant 0 : i32
    %c0_i32_0 = arith.constant 0 : i32
    %c0_i32_1 = arith.constant 0 : i32
    return %arg0, %c0_i32, %c0_i32_0 : i32, i32, i32
  }
}

</mosaic_0001>

<bundles_post_ra>
// kernel: tpu_custom_call.1
= control target key start
LH: loop header
LB: loop body
LE: loop exit
PB: predicated region body
PF: predicated region fallthrough
CT: control target
= control target key end

     0   :  { %10 = vsyncpa [#allocation3], 0  ;;  %s1018_s0 = inlined_call_operand.hbm [shape: s32[2,2,8], index: 0, kind: input, shape index: {}]   ;;  %s1019_s1 = inlined_call_operand.hbm [shape: f32[29,128], index: 1, kind: input, shape index: {}]   ;;  %s1020_s2 = inlined_call_operand.hbm [shape: f32[8,8], index: 2, kind: input, shape index: {}]   ;;  %s1021_s3 = inlined_call_operand.vmem [shape: f32[1,128], index: 3, kind: input, shape index: {}]   ;;  %s1022_s4 = inlined_call_operand.vmem [shape: f32[1,128], index: 4, kind: input, shape index: {}]   ;;  %s1023_s5 = inlined_call_operand.hbm [shape: f32[2,16,128], index: 5, kind: output, shape index: {}]  }
   0x1   :  { %12 = vsyncpa [#allocation3 + $0x1], 0 }
   0x2   :  { %13 = vsyncpa [#allocation6], 0 }
   0x3   :  { %14 = vsyncpa [#allocation4], 0 }
   0x4   :  { %16 = vsyncpa [#allocation4 + $0x1], 0  ;;  %s866_s18 = smov 0   ;;  %s868_s19 = smov 0  }
   0x5   :  { %s870_s20 = smov 0   ;;  %s872_s21 = smov 0  }
   0x6 LB: > { %s174_s24 = sshll.u32 %s1019_s1, 4  ;;  %s890_s25 = sadd.s32 4294967295, %s826_s21   ;;  %s826_s21 = sphi %s872_s21, %s1034_s21   ;;  %s822_s20 = sphi %s870_s20, %s1033_s20   ;;  %s818_s19 = sphi %s868_s19, %s1032_s19   ;;  %s814_s18 = sphi %s866_s18, %s1031_s18   ;;  %s175_s24 = int_to_ptr.hbm [resolvable:$true] %s174_s24 }
   0x7   : > { %p552_p0 = scmp.ge.s32.totalorder %s826_s21, 1  ;;  %p43_p1 = scmp.eq.s32.totalorder %s890_s25, 0 }
   0x8   : > { %p163_p2 = scmp.lt.s32.totalorder %s826_s21, 3  ;;  %s828_s27 = smov [#allocation5]  }
   0x9   : > { %s176_s28 = sshll.u32 %s828_s27, 4  ;;  %s189_s6 = sshll.u32 %s1020_s2, 4  ;;  %s177_s28 = int_to_ptr.vmem [resolvable:$true] %s176_s28  ;;  %s190_s6 = int_to_ptr.hbm [resolvable:$true] %s189_s6 }
   0xa   : > { %p895_p3 = pnand %p552_p0, %p163_p2  ;;  %s829_s7 = smov [#allocation7]  }
   0xb   : > { %s191_s8 = sshll.u32 %s829_s7, 4  ;;  %s830_s9 = smov 128   ;;  %s192_s8 = int_to_ptr.vmem [resolvable:$true] %s191_s8 }
   0xc   : > { %p597_p4 = pneg %p895_p3  ;;  %s831_s10 = smov 8  }
   0xd   : > { %s551_s11 = sadd.s32 4294967294, %s826_s21   ;;  %s909_s12 = sadd.s32 1, %s826_s21  }
   0xe   : > { %p598_p6 = pnand %p597_p4, %p43_p1  ;;  %s26_s13 = ssub.s32 %s826_s21, %s909_s12 }
   0xf   : > { %s29_s14 = sadd.s32 1, %s822_s20  ;;  %p27_p7 = scmp.eq.s32.totalorder %s26_s13, 0 }
  0x10   : > { %600 = dma.hbm_to_vmem [thread:$0]  (!%p598_p6), %s175_s24, 512, %s177_s28, [#allocation6], %s830_s9, %s830_s9, %s831_s10  }
  0x11   : > { %603 = dma.hbm_to_vmem [thread:$0]  (!%p598_p6), %s190_s6, 128, %s192_s8, [#allocation6]  }
  0x12   : > { %p36_p8 = scmp.ne.s32.totalorder %s822_s20, %s818_s19  ;;  %p37_p9 = scmp.eq.s32.totalorder %s826_s21, 0 }
  0x13   : > { %p42_p10 = scmp.ne.s32.totalorder %s818_s19, %s814_s18  ;;  %p150_p13 = scmp.eq.s32.totalorder %s890_s25, 1 }
  0x14   : > { %s920_s15 = scalar_select %p27_p7, %s822_s20, %s29_s14  }
  0x15   : > { %p922_p11 = por %p37_p9, %p36_p8  ;;  %p928_p12 = por %p43_p1, %p42_p10 }
  0x16   : > { %p156_p0 = scmp.eq.s32.totalorder %s551_s11, 1  ;;  %p614_p2 = scmp.lt.s32.totalorder %s826_s21, 2 }
  0x17   : > { %s208_s22 = sand.u32 1, %s822_s20   ;;  %p935_p4 = por %p150_p13, %p36_p8 }
  0x18   : > { %p939_p6 = por %p156_p0, %p42_p10  ;;  %s556_s27 = sshll.u32 %s208_s22, 1 }
  0x19   : > { %s557_s28 = sshll.u32 %s826_s21, 1  ;;  %s212_s7 = scalar_lea.vmem [#allocation2], %s556_s27 }
  0x1a   : > { %s216_s6 = scalar_lea.hbm %s1018_s0, %s557_s28  ;;  %s220_s8 = sshll.u32 %s212_s7, 4  ;;  %s221_s8 = int_to_ptr.vmem [resolvable:$true] %s220_s8 }
  0x1b   : > { %s218_s9 = sshll.u32 %s216_s6, 4  ;;  %p949_p7 = pnand %p614_p2, %p922_p11  ;;  %s219_s9 = int_to_ptr.hbm [resolvable:$true] %s218_s9 }
  0x1c   : > { %s209_s11 = scalar_lea.sflag [#allocation3], %s208_s22  ;;  %s726_s13 = sshra.s32 %s219_s9, 4  ;;  %s727_s13 = int_to_ptr.hbm [resolvable:$true] %s726_s13 }
  0x1d   : > { %s728_s14 = scalar_lea.hbm %s727_s13, 2  ;;  %p730_p9 = pneg %p949_p7 }
  0x1e   : > { %p729_p8 = scmp.ne.s32.totalorder %s727_s13, %s728_s14  ;;  %s733_s29 = scalar_lea.hbm %s1018_s0, 4 }
  0x1f   : > { %p734_p11 = scmp.lt.s32.totalorder %s727_s13, %s1018_s0  ;;  %p735_p0 = scmp.lt.s32.totalorder %s733_s29, %s728_s14 }
  0x20   : > { %p731_p10 = pnand %p730_p9, %p729_p8 }
  0x21   : > { %p736_p2 = por %p735_p0, %p734_p11 }
  0x22   : > { %p732_p13 = pneg %p731_p10 }
  0x24   : > { %p737_p5 = pnand %p736_p2, %p732_p13 }
  0x26   : > { %740 = shalt.err (!%p737_p5)
}
  0x27   : > { %607 = dma.hbm_to_vmem [thread:$0]  (!%p949_p7), %s219_s9, 32, %s221_s8, %s209_s11  }
  0x28   : > { %229 = sbr.rel (%p895_p3) target bundleno = 713 (0x2c9), region = 40  ;;  %s966_s22 = sand.u32 (!%p895_p3), 1, %s818_s19  }
  0x29   : > { %s559_s6 = sshll.u32 (!%p895_p3), %s966_s22, 1  ;;  %s232_s7 = scalar_lea.sflag (!%p895_p3), [#allocation3], %s966_s22 }
  0x2a   : > { %s235_s27 = scalar_lea.vmem (!%p895_p3), [#allocation2], %s559_s6 }
  0x2d   : > { %801 = dma.done.wait (%p928_p12), %s232_s7, 32  }
  0x2e   : > { %803 = vsyncadd (%p928_p12), %s232_s7, 4294967264 }
  0x2f   : > { %805 = dma.done.wait (%p43_p1), [#allocation6], 640  }
  0x30   : > { %807 = vsyncadd (%p43_p1), [#allocation6], 4294966656  ;;  %v304_v0 = vlaneseq  ;;  %v277_v2 = vld [vmem:[#allocation7] sm:$0xff]  ;;  %v273_v3 = vld [vmem:[%s235_s27] sm:$0x3]  ;;  %vm278_vm0 = vcmask 64512  }
  0x31   : > { %297 = vmatpush.msra.mxu0 %v277_v2  ;;  %vm274_vm1 = vcmp.ne.s32.totalorder %v273_v3, 1  ;;  %v832_v4 = vmov 0.0   ;;  %v313_v6 = vperm.slane %v273_v3, 1  ;;  %v306_v7 = vperm.slane %v273_v3, 0  ;;  %v348_v19 = vld [vmem:[#allocation5 + $0x18] sm:$0x1f] }
  0x32   : > { %v308_v1 = vshrl.u32 %v304_v0, 7  ;;  %v563_v5 = vsel %vm274_vm1, 1.0, %v832_v4  ;;  %v833_v11 = vmov 0   ;;  %vm356_vm3 = vcmask 1044480   ;;  %v347_v20 = vld [vmem:[#allocation5 + $0x10] sm:$0xff]  ;;  %v346_v21 = vld [vmem:[#allocation5 + $0x8] sm:$0xff] }
  0x33   : > { %564 = vmatmul.msk.f32.vlgmr.msra.gmra.mxu0 %vm278_vm0, %v563_v5  ;;  %v275_v12 = vsel %vm274_vm1, 1, %v833_v11  ;;  %567 = vmatpush.msk.msra.mxu1 %vm356_vm3, %v348_v19  ;;  %v345_v22 = vld [vmem:[#allocation5] sm:$0xff]  ;;  %v305_v25 = vand.u32 127, %v304_v0  ;;  %vm349_vm7 = vcmask 236544   ;;  %v660_v60 = vld [vmem:[%s1021_s3] ss:$0 sm:$0xff] }
  0x34   : > { %659 = vset.pattern.permute.xlu1 %v308_v1  ;;  %658 = vset.pattern.permute.xlu0 %v308_v1  ;;  %v661_v63 = vld [vmem:[%s1022_s4] ss:$0 sm:$0xff]  ;;  %s562_s10 = sshll.u32 %s966_s22, 4  ;;  %s575_s11 = sshll.u32 %s890_s25, 4 }
  0x35   : > { %576 = vmatpush.msk.msra.mxu2 %vm356_vm3, %v348_v19  ;;  %373 = vmatpush.msra.mxu1 %v347_v20  ;;  %s455_s28 = scalar_lea.hbm %s1023_s5, %s575_s11  ;;  %s272_s29 = scalar_lea.vmem [#allocation8], %s562_s10 }
  0x36   : > { %s456_s30 = sshll.u32 %s272_s29, 4  ;;  %s458_s16 = sshll.u32 %s455_s28, 4  ;;  %s457_s30 = int_to_ptr.vmem [resolvable:$true] %s456_s30  ;;  %s459_s16 = int_to_ptr.hbm [resolvable:$true] %s458_s16 }
  0x37   : > { %577 = vmatpush.msra.mxu2 %v347_v20  ;;  %374 = vmatpush.msra.mxu1 %v346_v21  ;;  %s444_s25 = scalar_lea.sflag [#allocation4], %s966_s22  ;;  %s770_s6 = sshra.s32 %s459_s16, 4  ;;  %s771_s6 = int_to_ptr.hbm [resolvable:$true] %s770_s6 }
  0x38   : > { %s772_s7 = scalar_lea.hbm %s771_s6, 16  ;;  %s776_s17 = scalar_lea.hbm %s1023_s5, 32 }
  0x39   : > { %578 = vmatpush.msra.mxu2 %v346_v21  ;;  %375 = vmatpush.msra.mxu1 %v345_v22  ;;  %p773_p1 = scmp.ne.s32.totalorder %s771_s6, %s772_s7  ;;  %p777_p12 = scmp.lt.s32.totalorder %s771_s6, %s1023_s5 }
  0x3a   : > { %p778_p7 = scmp.lt.s32.totalorder %s776_s17, %s772_s7 }
  0x3b   : > { %579 = vmatpush.msra.mxu2 %v345_v22  ;;  %p774_p3 = pnand %p773_p1, %p935_p4 }
  0x3c   : > { %318 = vperm.xlu0 %658, %v313_v6   ;;  %311 = vperm.xlu1 %659, %v306_v7   ;;  %p779_p8 = por %p778_p7, %p777_p12 }
  0x3d   : > { %p775_p5 = pneg %p774_p3 }
  0x3f   : > { %p780_p9 = pnand %p779_p8, %p775_p5 }
  0xae   : > { %v319_v23 = vpop.permute.xlu0 %318  ;;  %v312_v24 = vpop.permute.xlu1 %311 }
  0xaf   : > { %vm321_vm4 = vcmp.eq.s32.totalorder %v305_v25, %v319_v23  ;;  %vm320_vm8 = vcmp.eq.s32.totalorder %v305_v25, %v312_v24 }
  0xb0   : > { %v299_v8 = vpop.f32.mrf.mxu0 }
  0xb1   : > { %vm580_vm2 = vcmp.lt.s32.totalorder %v299_v8, 0  ;;  %v581_v9 = vceil.f32 %v299_v8  ;;  %v582_v10 = vfloor.f32 %v299_v8 }
  0xb3   : > { %v583_v13 = vsel %vm580_vm2, %v581_v9, %v582_v10 }
  0xb4   : > { %v584_v14 = vcvt.f32.s32 %v583_v13 }
  0xb6   : > { %v303_v15 = vmul.u32 %v584_v14, %v275_v12 }
  0xb8   : > { %v322_v16 = vadd.s32 20, %v303_v15 }
  0xba   : > { %v330_v17 = vperm.slane %v322_v16, 1  ;;  %v323_v18 = vperm.slane %v322_v16, 0 }
  0xbc   : > { %335 = vperm.xlu0 %658, %v330_v17   ;;  %328 = vperm.xlu1 %659, %v323_v18  }
 0x12e   : > { %v336_v26 = vpop.permute.xlu0 %335  ;;  %v329_v27 = vpop.permute.xlu1 %328 }
 0x12f   : > { %vm338_vm5 = vcmp.eq.s32.totalorder %v305_v25, %v336_v26  ;;  %vm337_vm6 = vcmp.eq.s32.totalorder %v305_v25, %v329_v27 }
 0x130   : > { %vm340_vm9 = vmor %vm321_vm4, %vm338_vm5 }
 0x131   : > { %vm339_vm10 = vmor %vm320_vm8, %vm337_vm6  ;;  %v566_v28 = vsel %vm340_vm9, 1.0, %v832_v4 }
 0x132   : > { %v565_v29 = vsel %vm339_vm10, 1.0, %v832_v4  ;;  %569 = vmatmul.msk.f32.vlgmr.msra.gmra.mxu2 %vm349_vm7, %v566_v28 }
 0x133   : > { %568 = vmatmul.msk.f32.vlgmr.msra.gmra.mxu1 %vm349_vm7, %v565_v29 }
 0x1b0   : > { %v377_v30 = vpop.f32.mrf.mxu1 }
 0x1b1   : > { %383 = vadd.xlane.f32.xlu2 %v377_v30 }
 0x1b5   : > { %v380_v31 = vpop.f32.mrf.mxu2 }
 0x1b9   : > { %385 = vadd.xlane.f32.xlu2 %v380_v31 }
 0x224   : > { %v384_v32 = vpop.xlane.xlu2 %383 }
 0x225   : > { %v387_v33 = vmul.f32 0.03125, %v384_v32 }
 0x227   : > { %v389_v34 = vsub.f32 %v377_v30, %v387_v33  ;;  %v397_v40 = vmul.f32 96.0, %v387_v33 }
 0x229   : > { %v391_v35 = vmul.f32 %v389_v34, %v389_v34  ;;  %v399_v41 = vmul.f32 %v397_v40, %v387_v33 }
 0x22b   : > { %393 = vadd.xlane.f32.xlu0 %v391_v35 }
 0x22c   : > { %v386_v36 = vpop.xlane.xlu2 %385 }
 0x22d   : > { %v388_v37 = vmul.f32 0.03125, %v386_v36 }
 0x22f   : > { %v390_v38 = vsub.f32 %v380_v31, %v388_v37  ;;  %v398_v44 = vmul.f32 96.0, %v388_v37 }
 0x231   : > { %v392_v39 = vmul.f32 %v390_v38, %v390_v38  ;;  %v400_v47 = vmul.f32 %v398_v44, %v388_v37 }
 0x233   : > { %395 = vadd.xlane.f32.xlu1 %v392_v39 }
 0x29e   : > { %v394_v42 = vpop.xlane.xlu0 %393 }
 0x29f   : > { %v401_v43 = vsub.f32 %v394_v42, %v399_v41 }
 0x2a1   : > { %v403_v45 = vmul.f32 0.03125, %v401_v43 }
 0x2a3   : > { %v405_v46 = vadd.f32 1e-12, %v403_v45 }
 0x2a5   : > { %662 = vrsqrt.f32 %v405_v46  ;;  %vm413_vm12 = vweird.f32 %v405_v46 }
 0x2a6   : > { %v396_v48 = vpop.xlane.xlu1 %395 }
 0x2a7   : > { %v402_v49 = vsub.f32 %v396_v48, %v400_v47 }
 0x2a9   : > { %v404_v50 = vmul.f32 0.03125, %v402_v49 }
 0x2ab   : > { %v663_v51 = vpop.eup %662  ;;  %v406_v52 = vadd.f32 1e-12, %v404_v50 }
 0x2ac   : > { %v408_v53 = vmul.f32 %v663_v51, %v405_v46  ;;  %vm414_vm11 = vweird.f32 %v663_v51 }
 0x2ad   : > { %664 = vrsqrt.f32 %v406_v52  ;;  %vm415_vm13 = vmor %vm413_vm12, %vm414_vm11  ;;  %vm423_vm15 = vweird.f32 %v406_v52 }
 0x2ae   : > { %v409_v54 = vmul.f32 %v663_v51, %v408_v53 }
 0x2b0   : > { %v410_v55 = vmul.f32 0.5, %v409_v54 }
 0x2b2   : > { %v411_v56 = vsub.f32 1.5, %v410_v55 }
 0x2b3   : > { %v665_v57 = vpop.eup %664 }
 0x2b4   : > { %v412_v58 = vmul.f32 %v663_v51, %v411_v56  ;;  %v418_v59 = vmul.f32 %v665_v57, %v406_v52  ;;  %vm424_vm14 = vweird.f32 %v665_v57 }
 0x2b5   : > { %vm425_vm0 = vmor %vm423_vm15, %vm424_vm14 }
 0x2b6   : > { %v416_v61 = vsel %vm415_vm13, %v663_v51, %v412_v58  ;;  %v419_v62 = vmul.f32 %v665_v57, %v418_v59 }
 0x2b7   : > { %v427_v0 = vmul.f32 %v416_v61, %v389_v34 }
 0x2b8   : > { %v420_v1 = vmul.f32 0.5, %v419_v62 }
 0x2b9   : > { %v433_v2 = vmul.f32 %v660_v60, %v427_v0 }
 0x2ba   : > { %v421_v3 = vsub.f32 1.5, %v420_v1 }
 0x2bb   : > { %v439_v4 = vadd.f32 %v661_v63, %v433_v2 }
 0x2bc   : > { %v422_v5 = vmul.f32 %v665_v57, %v421_v3 }
 0x2bd   : > { %441 = vst [vmem:[%s272_s29] sm:$0xff] %v439_v4 }
 0x2be   : > { %v426_v6 = vsel %vm425_vm0, %v665_v57, %v422_v5 }
 0x2bf   : > { %v428_v7 = vmul.f32 %v426_v6, %v390_v38 }
 0x2c1   : > { %v434_v8 = vmul.f32 %v660_v60, %v428_v7 }
 0x2c3   : > { %v440_v9 = vadd.f32 %v661_v63, %v434_v8 }
 0x2c5   : > { %442 = vst [vmem:[%s272_s29 + $0x8] sm:$0xff] %v440_v9 }
 0x2c6   : > { %783 = shalt.err (!%p780_p9)
}
 0x2c7   : > { %s834_s22 = smov 128   ;;  %s835_s10 = smov 8  }
 0x2c8   : > { %595 = dma.vmem_to_hbm [thread:$0]  (%p935_p4), %s457_s30, 256, %s459_s16, %s444_s25, %s834_s22, %s834_s22, %s835_s10  }
 0x2c9 PF: > { %s473_s11 = sand.u32 1, %s814_s18   ;;  %p1030_p10 = scmp.ge.s32.totalorder %s826_s21, 2 }
 0x2ca   : > { %s474_s13 = scalar_lea.sflag [#allocation4], %s473_s11 }
 0x2cb   : > { %p609_p13 = pnand %p1030_p10, %p939_p6 }
 0x2cd   : > { %p610_p11 = pneg %p609_p13 }
 0x2cf   : > { %809 = dma.done.wait (%p610_p11), %s474_s13, 256  }
 0x2d0   : > { %811 = vsyncadd (%p610_p11), %s474_s13, 4294967040  ;;  %p19_p0 = scmp.ge.s32.totalorder %s909_s12, 4   ;;  %s1031_s18 = smov %s818_s19 }
 0x2d1   : > { %s1032_s19 = smov %s822_s20  ;;  %s1033_s20 = smov %s920_s15 }
 0x2d2   : > { %s1034_s21 = smov %s909_s12  ;;  %21 = sbr.rel (!%p19_p0) target bundleno = 6 (0x6), region = 93 }
 0x2d7   :  { %480 = vsyncpa [#allocation3], 1 }
 0x2d8   :  { %482 = vsyncpa [#allocation3 + $0x1], 1 }
 0x2d9   :  { %483 = vsyncpa [#allocation6], 1 }
 0x2da   :  { %484 = vsyncpa [#allocation4], 1 }
 0x2db   :  { %486 = vsyncpa [#allocation4 + $0x1], 1 }

</bundles_post_ra>
